<compile_context>
chip_gen: v5e
topology: v5e:2x2
jax: 0.10.0
libtpu: 0.0.40
codegen_flags: <defaults>
</compile_context>

<pallas_src>
import jax
import jax.numpy as jnp
from jax.experimental import pallas as pl
from jax.experimental.pallas import tpu as pltpu


def _round_up(v, m):
    return ((v + m - 1) // m) * m


def _make_kernel(n_phi: int, n_rho: int, tb: int, set_size: int, compute_dtype):
    """Kernel specialized to static layer counts / tile size / set size."""

    def kernel(x_ref, *refs):
        o_ref = refs[-1]
        w_refs = refs[:-1]
        phi_refs = w_refs[: 2 * n_phi]
        rho_refs = w_refs[2 * n_phi:]

        # x already flattened to (tb*set_size, d_in) by the wrapper.
        h = x_ref[...]

        # phi hidden layers (Linear + ReLU), applied per set element.
        for i in range(n_phi - 1):
            w = phi_refs[2 * i][...]
            b = phi_refs[2 * i + 1][...]
            h = jnp.dot(h, w, preferred_element_type=jnp.float32) + b
            h = jnp.maximum(h, 0.0).astype(compute_dtype)

        # Invariant pooling BEFORE the last phi Linear:
        #   sum_i (h_i @ W + b) == (sum_i h_i) @ W + n*b   (n*b folded into bias)
        # f32 accumulation via dtype=, no materialized f32 copy of h.
        width = h.shape[-1]
        pooled = jnp.sum(h.reshape(tb, set_size, width), axis=1,
                         dtype=jnp.float32).astype(compute_dtype)

        w_last = phi_refs[2 * (n_phi - 1)][...]
        b_last = phi_refs[2 * (n_phi - 1) + 1][...]   # already scaled by set_size
        s = jnp.dot(pooled, w_last, preferred_element_type=jnp.float32) + b_last

        # rho MLP on the pooled representation (tb rows only).
        for i in range(n_rho):
            w = rho_refs[2 * i][...]
            b = rho_refs[2 * i + 1][...]
            s = jnp.dot(s.astype(compute_dtype), w,
                        preferred_element_type=jnp.float32) + b
            if i < n_rho - 1:
                s = jnp.maximum(s, 0.0)

        o_ref[...] = s.astype(o_ref.dtype)

    return kernel


def _prep_layers(params, compute_dtype, *, keep_first_in, last_bias_scale):
    """Transpose to [in, out], zero-pad every dim (except the first layer's
    input when keep_first_in) to a multiple of 128, cast weights to the compute
    dtype.  Biases stay f32 as [1, out_pad]; the last layer's bias is
    pre-scaled (set_size * b for phi's last layer -> no per-step multiply)."""
    prepped = []
    n_layers = len(params)
    for j, (w, b) in enumerate(params):
        w = jnp.asarray(w, jnp.float32)            # torch layout: [out, in]
        b = jnp.asarray(b, jnp.float32)            # [out]
        out_d, in_d = w.shape
        in_p = in_d if (keep_first_in and j == 0) else _round_up(in_d, 128)
        out_p = _round_up(out_d, 128)
        wt = jnp.zeros((in_p, out_p), jnp.float32).at[:in_d, :out_d].set(w.T)
        bb = jnp.zeros((1, out_p), jnp.float32).at[0, :out_d].set(b)
        if j == n_layers - 1:
            bb = bb * float(last_bias_scale)
        prepped.append((wt.astype(compute_dtype), bb))
    return prepped


def deepset_encoder(x, phi_params, rho_params, *, target_rows=2048):
    """DeepSetEncoder forward.

    Args:
      x:          [batch, set_size, dim_in]
      phi_params: list of (W, b) in PyTorch layout, W: [out, in], b: [out]
      rho_params: same layout; last layer's out dim is dim_out.
    Returns:
      [batch, dim_out]
    """
    bs, n, d_in = x.shape
    d_out = rho_params[-1][0].shape[0]
    d_out_p = _round_up(d_out, 128)
    cdt = x.dtype
    n_phi, n_rho = len(phi_params), len(rho_params)

    phi_p = _prep_layers(phi_params, cdt, keep_first_in=True, last_bias_scale=n)
    rho_p = _prep_layers(rho_params, cdt, keep_first_in=False, last_bias_scale=1)

    itemsize = jnp.dtype(cdt).itemsize
    align = {4: 8, 2: 16, 1: 32}.get(itemsize, 8)   # sublane packing per dtype

    # ---- batch tile: ~target_rows rows (tb*n) per grid step. ----
    tb = max(1, target_rows // max(n, 1))
    if bs >= 2 * align:
        # Keep >= 2 grid steps so the "parallel" axis can actually shard
        # across both v7x TensorCores.
        tb = min(tb, pl.cdiv(bs, 2))
        tb = max(align, (tb // align) * align)
    else:
        tb = bs                       # tiny batch: one full-extent tile

    weight_bytes = sum(w.size * w.dtype.itemsize + b.size * b.dtype.itemsize
                       for w, b in phi_p + rho_p)
    max_w = max([d_in] + [w.shape[1] for w, _ in phi_p + rho_p])

    def _vmem_estimate(tb_):
        x_tile = 2 * tb_ * n * d_in * itemsize        # double-buffered input
        out_tile = 2 * tb_ * d_out_p * itemsize       # double-buffered output
        acts = 3 * tb_ * n * max_w * 4                # f32 dot result + copies
        return 2 * weight_bytes + x_tile + out_tile + acts

    # v7x has only 64 MiB VMEM per TensorCore and weights are duplicated into
    # both cores under "parallel" semantics -> budget well below that.
    vmem_budget = 40 * 1024 * 1024
    while tb > align and _vmem_estimate(tb) > vmem_budget:
        tb = max(align, (tb // 2 // align) * align)

    bs_pad = pl.cdiv(bs, tb) * tb
    if bs_pad != bs:                  # tail-batch guard: pad, slice afterwards
        x = jnp.pad(x, ((0, bs_pad - bs), (0, 0), (0, 0)))
    x_flat = x.reshape(bs_pad * n, d_in)   # flatten in the wrapper (free, no
                                           # in-kernel relayout copy)

    vmem_limit = int(min(48 * 1024 * 1024,
                         max(int(_vmem_estimate(tb) * 1.5), 32 * 1024 * 1024)))

    kernel = _make_kernel(n_phi, n_rho, tb, n, cdt)

    def _build(weight_mode):
        def _w_spec(shape):
            if weight_mode is None:
                return pl.BlockSpec(shape, lambda g: (0, 0))
            return pl.BlockSpec(shape, lambda g: (0, 0),
                                pipeline_mode=weight_mode)

        inputs = [x_flat]
        in_specs = [pl.BlockSpec((tb * n, d_in), lambda g: (g, 0))]
        for w, b in phi_p + rho_p:
            inputs.append(w)
            in_specs.append(_w_spec(w.shape))
            inputs.append(b)
            in_specs.append(_w_spec(b.shape))

        call = pl.pallas_call(
            kernel,
            out_shape=jax.ShapeDtypeStruct((bs_pad, d_out_p), cdt),
            grid_spec=pltpu.PrefetchScalarGridSpec(
                num_scalar_prefetch=0,
                grid=(bs_pad // tb,),
                in_specs=in_specs,
                out_specs=pl.BlockSpec((tb, d_out_p), lambda g: (g, 0)),
            ),
            compiler_params=pltpu.CompilerParams(
                dimension_semantics=("parallel",),
                vmem_limit_bytes=vmem_limit),
        )
        return call, inputs

    # Weights/biases have a constant index_map -> request single buffering to
    # halve their resident VMEM footprint; fall back to default buffering if
    # this jax build rejects Buffered(1) in the pallas_call pipeline.
    try:
        call, inputs = _build(pl.Buffered(1))
        out = call(*inputs)
    except Exception:   # pragma: no cover - fallback keeps the kernel runnable
        call, inputs = _build(None)
        out = call(*inputs)

    return out[:bs, :d_out]


# ----------------------------- reference -----------------------------------
def _mlp_ref(h, params):
    for i, (w, b) in enumerate(params):
        h = h @ w.T + b
        if i < len(params) - 1:
            h = jax.nn.relu(h)
    return h


def _reference(x, phi_params, rho_params):
    out_phi = _mlp_ref(x, phi_params)           # [bs, n, d_in]
    summed = jnp.sum(out_phi, axis=1)           # [bs, d_in]
    return _mlp_ref(summed, rho_params)         # [bs, d_out]


if __name__ == "__main__":
    key = jax.random.PRNGKey(0)

    bs, set_size, dim_in, dim_out, width, nb_layer = 2, 8, 32, 32, 32, 2

    def mlp_init(key, d_in_, d_out_, width_, nb_layer_):
        dims = [d_in_] + [width_] * (nb_layer_ - 1) + [d_out_]
        params = []
        for i in range(nb_layer_):
            key, kw, kb = jax.random.split(key, 3)
            bound = 1.0 / (dims[i] ** 0.5)  # nn.Linear default init bounds
            w = jax.random.uniform(kw, (dims[i + 1], dims[i]), jnp.float32,
                                   -bound, bound)
            b = jax.random.uniform(kb, (dims[i + 1],), jnp.float32,
                                   -bound, bound)
            params.append((w, b))
        return key, params

    key, kx = jax.random.split(key)
    x = jax.random.normal(kx, (bs, set_size, dim_in), jnp.float32)

    key, phi_params = mlp_init(key, dim_in, dim_in, width, nb_layer)
    key, rho_params = mlp_init(key, dim_in, dim_out, width, nb_layer)

    out = deepset_encoder(x, phi_params, rho_params)
    out = jax.block_until_ready(out)
    ref = _reference(x, phi_params, rho_params)
    assert out.shape == (bs, dim_out)
    assert jnp.allclose(out, ref, atol=1e-4, rtol=1e-4), \
        float(jnp.max(jnp.abs(out - ref)))

    # Second check: multi-step grid + padded tail batch (exercises the tiling,
    # megacore-split and batch-padding paths).
    key, kx2 = jax.random.split(key)
    x2 = jax.random.normal(kx2, (20, set_size, dim_in), jnp.float32)
    out2 = jax.block_until_ready(
        deepset_encoder(x2, phi_params, rho_params, target_rows=64))
    ref2 = _reference(x2, phi_params, rho_params)
    assert out2.shape == (20, dim_out)
    assert jnp.allclose(out2, ref2, atol=1e-4, rtol=1e-4), \
        float(jnp.max(jnp.abs(out2 - ref2)))

    print("KERNEL_OK")
</pallas_src>

<mosaic_0001>
module attributes {stable_mosaic.version = 11 : i64} {
  func.func @kernel(%arg0: i32, %arg1: memref<16x32xf32, #tpu.memory_space<vmem>>, %arg2: memref<32x128xf32, #tpu.memory_space<vmem>>, %arg3: memref<1x128xf32, #tpu.memory_space<vmem>>, %arg4: memref<128x128xf32, #tpu.memory_space<vmem>>, %arg5: memref<1x128xf32, #tpu.memory_space<vmem>>, %arg6: memref<128x128xf32, #tpu.memory_space<vmem>>, %arg7: memref<1x128xf32, #tpu.memory_space<vmem>>, %arg8: memref<128x128xf32, #tpu.memory_space<vmem>>, %arg9: memref<1x128xf32, #tpu.memory_space<vmem>>, %arg10: memref<2x128xf32, #tpu.memory_space<vmem>>) attributes {dimension_semantics = [#tpu.dimension_semantics<parallel>], iteration_bounds = array<i64: 1>, scalar_prefetch = 0 : i64, scratch_operands = 0 : i64, tpu.core_type = #tpu.core_type<tc>, window_params = [{transform_indices = @transform_0, window_bounds = array<i64: 16, 32>}, {pipeline_mode = #tpu.pipeline_mode<synchronous>, transform_indices = @transform_1, window_bounds = array<i64: 32, 128>}, {pipeline_mode = #tpu.pipeline_mode<synchronous>, transform_indices = @transform_2, window_bounds = array<i64: 1, 128>}, {pipeline_mode = #tpu.pipeline_mode<synchronous>, transform_indices = @transform_3, window_bounds = array<i64: 128, 128>}, {pipeline_mode = #tpu.pipeline_mode<synchronous>, transform_indices = @transform_4, window_bounds = array<i64: 1, 128>}, {pipeline_mode = #tpu.pipeline_mode<synchronous>, transform_indices = @transform_5, window_bounds = array<i64: 128, 128>}, {pipeline_mode = #tpu.pipeline_mode<synchronous>, transform_indices = @transform_6, window_bounds = array<i64: 1, 128>}, {pipeline_mode = #tpu.pipeline_mode<synchronous>, transform_indices = @transform_7, window_bounds = array<i64: 128, 128>}, {pipeline_mode = #tpu.pipeline_mode<synchronous>, transform_indices = @transform_8, window_bounds = array<i64: 1, 128>}, {transform_indices = @transform_9, window_bounds = array<i64: 2, 128>}]} {
    %c0 = arith.constant 0 : index
    %c0_0 = arith.constant 0 : index
    %0 = vector.load %arg1[%c0, %c0_0] : memref<16x32xf32, #tpu.memory_space<vmem>>, vector<16x32xf32>
    %c0_1 = arith.constant 0 : index
    %c0_2 = arith.constant 0 : index
    %1 = vector.load %arg2[%c0_1, %c0_2] : memref<32x128xf32, #tpu.memory_space<vmem>>, vector<32x128xf32>
    %c0_3 = arith.constant 0 : index
    %c0_4 = arith.constant 0 : index
    %2 = vector.load %arg3[%c0_3, %c0_4] : memref<1x128xf32, #tpu.memory_space<vmem>>, vector<1x128xf32>
    %cst = arith.constant dense<0.000000e+00> : vector<16x128xf32>
    %3 = tpu.matmul %0, %1, %cst {dimension_numbers = #tpu.dot_dimension_numbers<[1], [0], [0], [1], [0, 0, 1, 1], [], []>} : vector<16x32xf32>, vector<32x128xf32>, vector<16x128xf32> -> vector<16x128xf32>
    %4 = vector.broadcast %2 : vector<1x128xf32> to vector<16x128xf32>
    %5 = arith.addf %3, %4 : vector<16x128xf32>
    %cst_5 = arith.constant 0.000000e+00 : f32
    %6 = vector.broadcast %cst_5 : f32 to vector<16x128xf32>
    %7 = arith.maximumf %5, %6 : vector<16x128xf32>
    %8 = vector.shape_cast %7 : vector<16x128xf32> to vector<2x8x128xf32>
    %cst_6 = arith.constant dense<0.000000e+00> : vector<2x128xf32>
    %9 = vector.multi_reduction <add>, %8, %cst_6 [1] : vector<2x8x128xf32> to vector<2x128xf32>
    %c0_7 = arith.constant 0 : index
    %c0_8 = arith.constant 0 : index
    %10 = vector.load %arg4[%c0_7, %c0_8] : memref<128x128xf32, #tpu.memory_space<vmem>>, vector<128x128xf32>
    %c0_9 = arith.constant 0 : index
    %c0_10 = arith.constant 0 : index
    %11 = vector.load %arg5[%c0_9, %c0_10] : memref<1x128xf32, #tpu.memory_space<vmem>>, vector<1x128xf32>
    %cst_11 = arith.constant dense<0.000000e+00> : vector<2x128xf32>
    %12 = tpu.matmul %9, %10, %cst_11 {dimension_numbers = #tpu.dot_dimension_numbers<[1], [0], [0], [1], [0, 0, 1, 1], [], []>} : vector<2x128xf32>, vector<128x128xf32>, vector<2x128xf32> -> vector<2x128xf32>
    %13 = vector.broadcast %11 : vector<1x128xf32> to vector<2x128xf32>
    %14 = arith.addf %12, %13 : vector<2x128xf32>
    %c0_12 = arith.constant 0 : index
    %c0_13 = arith.constant 0 : index
    %15 = vector.load %arg6[%c0_12, %c0_13] : memref<128x128xf32, #tpu.memory_space<vmem>>, vector<128x128xf32>
    %c0_14 = arith.constant 0 : index
    %c0_15 = arith.constant 0 : index
    %16 = vector.load %arg7[%c0_14, %c0_15] : memref<1x128xf32, #tpu.memory_space<vmem>>, vector<1x128xf32>
    %cst_16 = arith.constant dense<0.000000e+00> : vector<2x128xf32>
    %17 = tpu.matmul %14, %15, %cst_16 {dimension_numbers = #tpu.dot_dimension_numbers<[1], [0], [0], [1], [0, 0, 1, 1], [], []>} : vector<2x128xf32>, vector<128x128xf32>, vector<2x128xf32> -> vector<2x128xf32>
    %18 = vector.broadcast %16 : vector<1x128xf32> to vector<2x128xf32>
    %19 = arith.addf %17, %18 : vector<2x128xf32>
    %cst_17 = arith.constant 0.000000e+00 : f32
    %20 = vector.broadcast %cst_17 : f32 to vector<2x128xf32>
    %21 = arith.maximumf %19, %20 : vector<2x128xf32>
    %c0_18 = arith.constant 0 : index
    %c0_19 = arith.constant 0 : index
    %22 = vector.load %arg8[%c0_18, %c0_19] : memref<128x128xf32, #tpu.memory_space<vmem>>, vector<128x128xf32>
    %c0_20 = arith.constant 0 : index
    %c0_21 = arith.constant 0 : index
    %23 = vector.load %arg9[%c0_20, %c0_21] : memref<1x128xf32, #tpu.memory_space<vmem>>, vector<1x128xf32>
    %cst_22 = arith.constant dense<0.000000e+00> : vector<2x128xf32>
    %24 = tpu.matmul %21, %22, %cst_22 {dimension_numbers = #tpu.dot_dimension_numbers<[1], [0], [0], [1], [0, 0, 1, 1], [], []>} : vector<2x128xf32>, vector<128x128xf32>, vector<2x128xf32> -> vector<2x128xf32>
    %25 = vector.broadcast %23 : vector<1x128xf32> to vector<2x128xf32>
    %26 = arith.addf %24, %25 : vector<2x128xf32>
    %c0_23 = arith.constant 0 : index
    %c0_24 = arith.constant 0 : index
    %27 = vector.load %arg10[%c0_23, %c0_24] : memref<2x128xf32, #tpu.memory_space<vmem>>, vector<2x128xf32>
    tpu.vector_store %arg10[%c0_23, %c0_24], %26 {strides = array<i32>} : memref<2x128xf32, #tpu.memory_space<vmem>>, vector<2x128xf32>,
    return
  }
  func.func @transform_0(%arg0: i32) -> (i32, i32) {
    %c0_i32 = arith.constant 0 : i32
    %c0_i32_0 = arith.constant 0 : i32
    return %arg0, %c0_i32 : i32, i32
  }
  func.func @transform_1(%arg0: i32) -> (i32, i32) {
    %c0_i32 = arith.constant 0 : i32
    %c0_i32_0 = arith.constant 0 : i32
    %c0_i32_1 = arith.constant 0 : i32
    return %c0_i32, %c0_i32_0 : i32, i32
  }
  func.func @transform_2(%arg0: i32) -> (i32, i32) {
    %c0_i32 = arith.constant 0 : i32
    %c0_i32_0 = arith.constant 0 : i32
    %c0_i32_1 = arith.constant 0 : i32
    return %c0_i32, %c0_i32_0 : i32, i32
  }
  func.func @transform_3(%arg0: i32) -> (i32, i32) {
    %c0_i32 = arith.constant 0 : i32
    %c0_i32_0 = arith.constant 0 : i32
    %c0_i32_1 = arith.constant 0 : i32
    return %c0_i32, %c0_i32_0 : i32, i32
  }
  func.func @transform_4(%arg0: i32) -> (i32, i32) {
    %c0_i32 = arith.constant 0 : i32
    %c0_i32_0 = arith.constant 0 : i32
    %c0_i32_1 = arith.constant 0 : i32
    return %c0_i32, %c0_i32_0 : i32, i32
  }
  func.func @transform_5(%arg0: i32) -> (i32, i32) {
    %c0_i32 = arith.constant 0 : i32
    %c0_i32_0 = arith.constant 0 : i32
    %c0_i32_1 = arith.constant 0 : i32
    return %c0_i32, %c0_i32_0 : i32, i32
  }
  func.func @transform_6(%arg0: i32) -> (i32, i32) {
    %c0_i32 = arith.constant 0 : i32
    %c0_i32_0 = arith.constant 0 : i32
    %c0_i32_1 = arith.constant 0 : i32
    return %c0_i32, %c0_i32_0 : i32, i32
  }
  func.func @transform_7(%arg0: i32) -> (i32, i32) {
    %c0_i32 = arith.constant 0 : i32
    %c0_i32_0 = arith.constant 0 : i32
    %c0_i32_1 = arith.constant 0 : i32
    return %c0_i32, %c0_i32_0 : i32, i32
  }
  func.func @transform_8(%arg0: i32) -> (i32, i32) {
    %c0_i32 = arith.constant 0 : i32
    %c0_i32_0 = arith.constant 0 : i32
    %c0_i32_1 = arith.constant 0 : i32
    return %c0_i32, %c0_i32_0 : i32, i32
  }
  func.func @transform_9(%arg0: i32) -> (i32, i32) {
    %c0_i32 = arith.constant 0 : i32
    %c0_i32_0 = arith.constant 0 : i32
    return %arg0, %c0_i32 : i32, i32
  }
}

module attributes {stable_mosaic.version = 11 : i64} {
  func.func @kernel(%arg0: i32, %arg1: memref<16x32xf32, #tpu.memory_space<vmem>>, %arg2: memref<32x128xf32, #tpu.memory_space<vmem>>, %arg3: memref<1x128xf32, #tpu.memory_space<vmem>>, %arg4: memref<128x128xf32, #tpu.memory_space<vmem>>, %arg5: memref<1x128xf32, #tpu.memory_space<vmem>>, %arg6: memref<128x128xf32, #tpu.memory_space<vmem>>, %arg7: memref<1x128xf32, #tpu.memory_space<vmem>>, %arg8: memref<128x128xf32, #tpu.memory_space<vmem>>, %arg9: memref<1x128xf32, #tpu.memory_space<vmem>>, %arg10: memref<2x128xf32, #tpu.memory_space<vmem>>) attributes {dimension_semantics = [#tpu.dimension_semantics<parallel>], iteration_bounds = array<i64: 1>, scalar_prefetch = 0 : i64, scratch_operands = 0 : i64, tpu.core_type = #tpu.core_type<tc>, window_params = [{transform_indices = @transform_0, window_bounds = array<i64: 16, 32>}, {pipeline_mode = #tpu.pipeline_mode<synchronous>, transform_indices = @transform_1, window_bounds = array<i64: 32, 128>}, {pipeline_mode = #tpu.pipeline_mode<synchronous>, transform_indices = @transform_2, window_bounds = array<i64: 1, 128>}, {pipeline_mode = #tpu.pipeline_mode<synchronous>, transform_indices = @transform_3, window_bounds = array<i64: 128, 128>}, {pipeline_mode = #tpu.pipeline_mode<synchronous>, transform_indices = @transform_4, window_bounds = array<i64: 1, 128>}, {pipeline_mode = #tpu.pipeline_mode<synchronous>, transform_indices = @transform_5, window_bounds = array<i64: 128, 128>}, {pipeline_mode = #tpu.pipeline_mode<synchronous>, transform_indices = @transform_6, window_bounds = array<i64: 1, 128>}, {pipeline_mode = #tpu.pipeline_mode<synchronous>, transform_indices = @transform_7, window_bounds = array<i64: 128, 128>}, {pipeline_mode = #tpu.pipeline_mode<synchronous>, transform_indices = @transform_8, window_bounds = array<i64: 1, 128>}, {transform_indices = @transform_9, window_bounds = array<i64: 2, 128>}]} {
    %c0 = arith.constant 0 : index
    %c0_0 = arith.constant 0 : index
    %0 = vector.load %arg1[%c0, %c0_0] : memref<16x32xf32, #tpu.memory_space<vmem>>, vector<16x32xf32>
    %c0_1 = arith.constant 0 : index
    %c0_2 = arith.constant 0 : index
    %1 = vector.load %arg2[%c0_1, %c0_2] : memref<32x128xf32, #tpu.memory_space<vmem>>, vector<32x128xf32>
    %c0_3 = arith.constant 0 : index
    %c0_4 = arith.constant 0 : index
    %2 = vector.load %arg3[%c0_3, %c0_4] : memref<1x128xf32, #tpu.memory_space<vmem>>, vector<1x128xf32>
    %cst = arith.constant dense<0.000000e+00> : vector<16x128xf32>
    %3 = tpu.matmul %0, %1, %cst {dimension_numbers = #tpu.dot_dimension_numbers<[1], [0], [0], [1], [0, 0, 1, 1], [], []>} : vector<16x32xf32>, vector<32x128xf32>, vector<16x128xf32> -> vector<16x128xf32>
    %4 = vector.broadcast %2 : vector<1x128xf32> to vector<16x128xf32>
    %5 = arith.addf %3, %4 : vector<16x128xf32>
    %cst_5 = arith.constant 0.000000e+00 : f32
    %6 = vector.broadcast %cst_5 : f32 to vector<16x128xf32>
    %7 = arith.maximumf %5, %6 : vector<16x128xf32>
    %8 = vector.shape_cast %7 : vector<16x128xf32> to vector<2x8x128xf32>
    %cst_6 = arith.constant dense<0.000000e+00> : vector<2x128xf32>
    %9 = vector.multi_reduction <add>, %8, %cst_6 [1] : vector<2x8x128xf32> to vector<2x128xf32>
    %c0_7 = arith.constant 0 : index
    %c0_8 = arith.constant 0 : index
    %10 = vector.load %arg4[%c0_7, %c0_8] : memref<128x128xf32, #tpu.memory_space<vmem>>, vector<128x128xf32>
    %c0_9 = arith.constant 0 : index
    %c0_10 = arith.constant 0 : index
    %11 = vector.load %arg5[%c0_9, %c0_10] : memref<1x128xf32, #tpu.memory_space<vmem>>, vector<1x128xf32>
    %cst_11 = arith.constant dense<0.000000e+00> : vector<2x128xf32>
    %12 = tpu.matmul %9, %10, %cst_11 {dimension_numbers = #tpu.dot_dimension_numbers<[1], [0], [0], [1], [0, 0, 1, 1], [], []>} : vector<2x128xf32>, vector<128x128xf32>, vector<2x128xf32> -> vector<2x128xf32>
    %13 = vector.broadcast %11 : vector<1x128xf32> to vector<2x128xf32>
    %14 = arith.addf %12, %13 : vector<2x128xf32>
    %c0_12 = arith.constant 0 : index
    %c0_13 = arith.constant 0 : index
    %15 = vector.load %arg6[%c0_12, %c0_13] : memref<128x128xf32, #tpu.memory_space<vmem>>, vector<128x128xf32>
    %c0_14 = arith.constant 0 : index
    %c0_15 = arith.constant 0 : index
    %16 = vector.load %arg7[%c0_14, %c0_15] : memref<1x128xf32, #tpu.memory_space<vmem>>, vector<1x128xf32>
    %cst_16 = arith.constant dense<0.000000e+00> : vector<2x128xf32>
    %17 = tpu.matmul %14, %15, %cst_16 {dimension_numbers = #tpu.dot_dimension_numbers<[1], [0], [0], [1], [0, 0, 1, 1], [], []>} : vector<2x128xf32>, vector<128x128xf32>, vector<2x128xf32> -> vector<2x128xf32>
    %18 = vector.broadcast %16 : vector<1x128xf32> to vector<2x128xf32>
    %19 = arith.addf %17, %18 : vector<2x128xf32>
    %cst_17 = arith.constant 0.000000e+00 : f32
    %20 = vector.broadcast %cst_17 : f32 to vector<2x128xf32>
    %21 = arith.maximumf %19, %20 : vector<2x128xf32>
    %c0_18 = arith.constant 0 : index
    %c0_19 = arith.constant 0 : index
    %22 = vector.load %arg8[%c0_18, %c0_19] : memref<128x128xf32, #tpu.memory_space<vmem>>, vector<128x128xf32>
    %c0_20 = arith.constant 0 : index
    %c0_21 = arith.constant 0 : index
    %23 = vector.load %arg9[%c0_20, %c0_21] : memref<1x128xf32, #tpu.memory_space<vmem>>, vector<1x128xf32>
    %cst_22 = arith.constant dense<0.000000e+00> : vector<2x128xf32>
    %24 = tpu.matmul %21, %22, %cst_22 {dimension_numbers = #tpu.dot_dimension_numbers<[1], [0], [0], [1], [0, 0, 1, 1], [], []>} : vector<2x128xf32>, vector<128x128xf32>, vector<2x128xf32> -> vector<2x128xf32>
    %25 = vector.broadcast %23 : vector<1x128xf32> to vector<2x128xf32>
    %26 = arith.addf %24, %25 : vector<2x128xf32>
    %c0_23 = arith.constant 0 : index
    %c0_24 = arith.constant 0 : index
    %27 = vector.load %arg10[%c0_23, %c0_24] : memref<2x128xf32, #tpu.memory_space<vmem>>, vector<2x128xf32>
    tpu.vector_store %arg10[%c0_23, %c0_24], %26 {strides = array<i32>} : memref<2x128xf32, #tpu.memory_space<vmem>>, vector<2x128xf32>,
    return
  }
  func.func @transform_0(%arg0: i32) -> (i32, i32) {
    %c0_i32 = arith.constant 0 : i32
    %c0_i32_0 = arith.constant 0 : i32
    return %arg0, %c0_i32 : i32, i32
  }
  func.func @transform_1(%arg0: i32) -> (i32, i32) {
    %c0_i32 = arith.constant 0 : i32
    %c0_i32_0 = arith.constant 0 : i32
    %c0_i32_1 = arith.constant 0 : i32
    return %c0_i32, %c0_i32_0 : i32, i32
  }
  func.func @transform_2(%arg0: i32) -> (i32, i32) {
    %c0_i32 = arith.constant 0 : i32
    %c0_i32_0 = arith.constant 0 : i32
    %c0_i32_1 = arith.constant 0 : i32
    return %c0_i32, %c0_i32_0 : i32, i32
  }
  func.func @transform_3(%arg0: i32) -> (i32, i32) {
    %c0_i32 = arith.constant 0 : i32
    %c0_i32_0 = arith.constant 0 : i32
    %c0_i32_1 = arith.constant 0 : i32
    return %c0_i32, %c0_i32_0 : i32, i32
  }
  func.func @transform_4(%arg0: i32) -> (i32, i32) {
    %c0_i32 = arith.constant 0 : i32
    %c0_i32_0 = arith.constant 0 : i32
    %c0_i32_1 = arith.constant 0 : i32
    return %c0_i32, %c0_i32_0 : i32, i32
  }
  func.func @transform_5(%arg0: i32) -> (i32, i32) {
    %c0_i32 = arith.constant 0 : i32
    %c0_i32_0 = arith.constant 0 : i32
    %c0_i32_1 = arith.constant 0 : i32
    return %c0_i32, %c0_i32_0 : i32, i32
  }
  func.func @transform_6(%arg0: i32) -> (i32, i32) {
    %c0_i32 = arith.constant 0 : i32
    %c0_i32_0 = arith.constant 0 : i32
    %c0_i32_1 = arith.constant 0 : i32
    return %c0_i32, %c0_i32_0 : i32, i32
  }
  func.func @transform_7(%arg0: i32) -> (i32, i32) {
    %c0_i32 = arith.constant 0 : i32
    %c0_i32_0 = arith.constant 0 : i32
    %c0_i32_1 = arith.constant 0 : i32
    return %c0_i32, %c0_i32_0 : i32, i32
  }
  func.func @transform_8(%arg0: i32) -> (i32, i32) {
    %c0_i32 = arith.constant 0 : i32
    %c0_i32_0 = arith.constant 0 : i32
    %c0_i32_1 = arith.constant 0 : i32
    return %c0_i32, %c0_i32_0 : i32, i32
  }
  func.func @transform_9(%arg0: i32) -> (i32, i32) {
    %c0_i32 = arith.constant 0 : i32
    %c0_i32_0 = arith.constant 0 : i32
    return %arg0, %c0_i32 : i32, i32
  }
}

</mosaic_0001>

<bundles_post_ra>
// kernel: tpu_custom_call.1
= control target key start
LH: loop header
LB: loop body
LE: loop exit
PB: predicated region body
PF: predicated region fallthrough
CT: control target
= control target key end

     0   :  { %14 = vsyncpa [#allocation3], 0  ;;  %s565_s0 = inlined_call_operand.hbm [shape: f32[16,32], index: 0, kind: input, shape index: {}]   ;;  %s566_s1 = inlined_call_operand.hbm [shape: f32[32,128], index: 1, kind: input, shape index: {}]   ;;  %s567_s2 = inlined_call_operand.vmem [shape: f32[1,128], index: 2, kind: input, shape index: {}]   ;;  %s568_s3 = inlined_call_operand.hbm [shape: f32[128,128], index: 3, kind: input, shape index: {}]   ;;  %s569_s4 = inlined_call_operand.vmem [shape: f32[1,128], index: 4, kind: input, shape index: {}]   ;;  %s570_s5 = inlined_call_operand.hbm [shape: f32[128,128], index: 5, kind: input, shape index: {}]   ;;  %s571_s6 = inlined_call_operand.vmem [shape: f32[1,128], index: 6, kind: input, shape index: {}]   ;;  %s572_s7 = inlined_call_operand.hbm [shape: f32[128,128], index: 7, kind: input, shape index: {}]   ;;  %s573_s8 = inlined_call_operand.vmem [shape: f32[1,128], index: 8, kind: input, shape index: {}]   ;;  %s574_s9 = inlined_call_operand.hbm [shape: f32[2,128], index: 9, kind: output, shape index: {}]  }
   0x1   :  { %15 = vsyncpa [#allocation6], 0 }
   0x2   :  { %16 = vsyncpa [#allocation9], 0 }
   0x3   :  { %17 = vsyncpa [#allocation4], 0  ;;  %s35_s11 = sshll.u32 %s566_s1, 4  ;;  %s477_s12 = smov [#allocation5]   ;;  %s36_s11 = int_to_ptr.hbm [resolvable:$true] %s35_s11 }
   0x4   :  { %s37_s13 = sshll.u32 %s477_s12, 4  ;;  %s65_s16 = sshll.u32 %s570_s5, 4  ;;  %s38_s13 = int_to_ptr.vmem [resolvable:$true] %s37_s13  ;;  %s66_s16 = int_to_ptr.hbm [resolvable:$true] %s65_s16 }
   0x5   :  { %s478_s17 = smov 128   ;;  %s479_s18 = smov 8  }
   0x6   :  { %43 = dma.hbm_to_vmem [thread:$0]  %s36_s11, 512, %s38_s13, [#allocation6], %s478_s17, %s478_s17, %s479_s18  }
   0x7   :  { %s480_s19 = smov [#allocation8]   ;;  %s22_s23 = sshll.u32 %s565_s0, 4  ;;  %s23_s23 = int_to_ptr.hbm [resolvable:$true] %s22_s23 }
   0x8   :  { %s67_s20 = sshll.u32 %s480_s19, 4  ;;  %s50_s25 = sshll.u32 %s568_s3, 4  ;;  %s68_s20 = int_to_ptr.vmem [resolvable:$true] %s67_s20  ;;  %s51_s25 = int_to_ptr.hbm [resolvable:$true] %s50_s25 }
   0x9   :  { %73 = dma.hbm_to_vmem [thread:$0]  %s66_s16, 2048, %s68_s20, [#allocation9], %s478_s17, %s478_s17, %s479_s18  }
   0xa   :  { %s481_s26 = smov [#allocation2]   ;;  %s482_s5 = smov [#allocation7]  }
   0xb   :  { %s24_s27 = sshll.u32 %s481_s26, 4  ;;  %s52_s28 = sshll.u32 %s482_s5, 4  ;;  %s25_s27 = int_to_ptr.vmem [resolvable:$true] %s24_s27  ;;  %s53_s28 = int_to_ptr.vmem [resolvable:$true] %s52_s28 }
   0xc   :  { %30 = dma.hbm_to_vmem [thread:$0]  %s23_s23, 256, %s25_s27, [#allocation3], %s478_s17, %s478_s17, %s479_s18  }
   0xd   :  { %s80_s10 = sshll.u32 %s572_s7, 4  ;;  %s483_s0 = smov [#allocation10]   ;;  %s81_s10 = int_to_ptr.hbm [resolvable:$true] %s80_s10 }
   0xe   :  { %58 = dma.hbm_to_vmem [thread:$0]  %s51_s25, 2048, %s53_s28, [#allocation6], %s478_s17, %s478_s17, %s479_s18  }
   0xf   :  { %s82_s11 = sshll.u32 %s483_s0, 4  ;;  %s83_s11 = int_to_ptr.vmem [resolvable:$true] %s82_s11 }
  0x10   :  { %88 = dma.hbm_to_vmem [thread:$0]  %s81_s10, 2048, %s83_s11, [#allocation9], %s478_s17, %s478_s17, %s479_s18  }
  0x11   :  { %469 = dma.done.wait [#allocation3], 256  }
  0x12   :  { %470 = vsyncadd [#allocation3], 4294967040 }
  0x13   :  { %471 = dma.done.wait [#allocation6], 2560  }
  0x14   :  { %472 = vsyncadd [#allocation6], 4294964736 }
  0x15   :  { %473 = dma.done.wait [#allocation9], 4096  }
  0x16   :  { %474 = vsyncadd [#allocation9], 4294963200  ;;  %v116_v0 = vld [vmem:[#allocation5 + $0x18] sm:$0xff]  ;;  %v115_v1 = vld [vmem:[#allocation5 + $0x10] sm:$0xff]  ;;  %vm121_vm0 = vcmask 261120   ;;  %vm187_vm1 = vcmask 1041409  }
  0x17   :  { %140 = vmatpush.msra.mxu0 %v116_v0  ;;  %v114_v2 = vld [vmem:[#allocation5 + $0x8] sm:$0xff]  ;;  %v180_v3 = vld [vmem:[#allocation7 + $0x78] sm:$0xff]  ;;  %v179_v4 = vld [vmem:[#allocation7 + $0x70] sm:$0xff]  ;;  %s299_s20 = sshll.u32 %s574_s9, 4  ;;  %s300_s20 = int_to_ptr.hbm [resolvable:$true] %s299_s20 }
  0x18   :  { %v113_v5 = vld [vmem:[#allocation5] sm:$0xff]  ;;  %190 = vmatpush.msra.mxu1 %v180_v3  ;;  %v178_v6 = vld [vmem:[#allocation7 + $0x68] sm:$0xff]  ;;  %v111_v7 = vld [vmem:[#allocation2] sm:$0xff] }
  0x19   :  { %141 = vmatpush.msra.mxu0 %v115_v1  ;;  %v112_v8 = vld [vmem:[#allocation2 + $0x8] sm:$0xff]  ;;  %v177_v9 = vld [vmem:[#allocation7 + $0x60] sm:$0xff]  ;;  %v175_v11 = vld [vmem:[#allocation7 + $0x50] sm:$0xff] }
  0x1a   :  { %191 = vmatpush.msra.mxu1 %v179_v4  ;;  %v176_v10 = vld [vmem:[#allocation7 + $0x58] sm:$0xff]  ;;  %v174_v12 = vld [vmem:[#allocation7 + $0x48] sm:$0xff]  ;;  %v173_v13 = vld [vmem:[#allocation7 + $0x40] sm:$0xff] }
  0x1b   :  { %142 = vmatpush.msra.mxu0 %v114_v2  ;;  %v172_v14 = vld [vmem:[#allocation7 + $0x38] sm:$0xff]  ;;  %v171_v15 = vld [vmem:[#allocation7 + $0x30] sm:$0xff]  ;;  %v170_v16 = vld [vmem:[#allocation7 + $0x28] sm:$0xff] }
  0x1c   :  { %192 = vmatpush.msra.mxu1 %v178_v6  ;;  %v169_v17 = vld [vmem:[#allocation7 + $0x20] sm:$0xff]  ;;  %v168_v18 = vld [vmem:[#allocation7 + $0x18] sm:$0xff]  ;;  %v167_v19 = vld [vmem:[#allocation7 + $0x10] sm:$0xff] }
  0x1d   :  { %143 = vmatpush.msra.mxu0 %v113_v5  ;;  %v166_v20 = vld [vmem:[#allocation7 + $0x8] sm:$0xff]  ;;  %v165_v21 = vld [vmem:[#allocation7] sm:$0xff]  ;;  %v225_v22 = vld [vmem:[#allocation8 + $0x78] sm:$0xff] }
  0x1e   :  { %311 = vmatmul.msk.f32.vlgmr.msra.gmra.mxu0 %vm121_vm0, %v111_v7  ;;  %193 = vmatpush.msra.mxu1 %v177_v9  ;;  %v224_v23 = vld [vmem:[#allocation8 + $0x70] sm:$0xff]  ;;  %v223_v24 = vld [vmem:[#allocation8 + $0x68] sm:$0xff]  ;;  %v222_v26 = vld [vmem:[#allocation8 + $0x60] sm:$0xff] }
  0x1f   :  { %230 = vmatpush.msra.mxu2 %v225_v22  ;;  %v321_v25 = vld [vmem:[%s567_s2] ss:$0 sm:$0xff]  ;;  %v221_v28 = vld [vmem:[#allocation8 + $0x58] sm:$0xff]  ;;  %v219_v32 = vld [vmem:[#allocation8 + $0x48] sm:$0xff] }
  0x20   :  { %194 = vmatpush.msra.mxu1 %v176_v10  ;;  %v220_v30 = vld [vmem:[#allocation8 + $0x50] sm:$0xff]  ;;  %v218_v34 = vld [vmem:[#allocation8 + $0x40] sm:$0xff]  ;;  %v217_v37 = vld [vmem:[#allocation8 + $0x38] sm:$0xff] }
  0x21   :  { %231 = vmatpush.msra.mxu2 %v224_v23  ;;  %v216_v39 = vld [vmem:[#allocation8 + $0x30] sm:$0xff]  ;;  %v215_v42 = vld [vmem:[#allocation8 + $0x28] sm:$0xff]  ;;  %v214_v44 = vld [vmem:[#allocation8 + $0x20] sm:$0xff] }
  0x22   :  { %195 = vmatpush.msra.mxu1 %v175_v11  ;;  %v213_v47 = vld [vmem:[#allocation8 + $0x18] sm:$0xff]  ;;  %v212_v49 = vld [vmem:[#allocation8 + $0x10] sm:$0xff]  ;;  %v211_v56 = vld [vmem:[#allocation8 + $0x8] sm:$0xff] }
  0x23   :  { %232 = vmatpush.msra.mxu2 %v223_v24  ;;  %v210_v57 = vld [vmem:[#allocation8] sm:$0xff]  ;;  %v266_v58 = vld [vmem:[#allocation10 + $0x78] sm:$0xff]  ;;  %v265_v59 = vld [vmem:[#allocation10 + $0x70] sm:$0xff] }
  0x24   :  { %196 = vmatpush.msra.mxu1 %v174_v12  ;;  %271 = vmatpush.msra.mxu3 %v266_v58  ;;  %v264_v60 = vld [vmem:[#allocation10 + $0x68] sm:$0xff]  ;;  %v263_v61 = vld [vmem:[#allocation10 + $0x60] sm:$0xff]  ;;  %v262_v62 = vld [vmem:[#allocation10 + $0x58] sm:$0xff] }
  0x25   :  { %233 = vmatpush.msra.mxu2 %v222_v26  ;;  %v261_v63 = vld [vmem:[#allocation10 + $0x50] sm:$0xff]  ;;  %v260_v0 = vld [vmem:[#allocation10 + $0x48] sm:$0xff]  ;;  %v259_v1 = vld [vmem:[#allocation10 + $0x40] sm:$0xff] }
  0x26   :  { %312 = vmatmul.msk.f32.gmra.mxu0 %vm121_vm0, %v112_v8  ;;  %197 = vmatpush.msra.mxu1 %v173_v13  ;;  %v258_v2 = vld [vmem:[#allocation10 + $0x38] sm:$0xff]  ;;  %v257_v3 = vld [vmem:[#allocation10 + $0x30] sm:$0xff]  ;;  %v256_v4 = vld [vmem:[#allocation10 + $0x28] sm:$0xff] }
  0x27   :  { %234 = vmatpush.msra.mxu2 %v221_v28  ;;  %272 = vmatpush.msra.mxu3 %v265_v59  ;;  %v255_v5 = vld [vmem:[#allocation10 + $0x20] sm:$0xff]  ;;  %v254_v6 = vld [vmem:[#allocation10 + $0x18] sm:$0xff]  ;;  %v322_v7 = vld [vmem:[%s569_s4] ss:$0 sm:$0xff]  ;;  %s484_s4 = smov [#allocation11]  }
  0x28   :  { %198 = vmatpush.msra.mxu1 %v172_v14  ;;  %v253_v10 = vld [vmem:[#allocation10 + $0x10] sm:$0xff]  ;;  %v252_v11 = vld [vmem:[#allocation10 + $0x8] sm:$0xff]  ;;  %v251_v12 = vld [vmem:[#allocation10] sm:$0xff]  ;;  %s297_s17 = sshll.u32 %s484_s4, 4  ;;  %s298_s17 = int_to_ptr.vmem [resolvable:$true] %s297_s17 }
  0x29   :  { %235 = vmatpush.msra.mxu2 %v220_v30  ;;  %273 = vmatpush.msra.mxu3 %v264_v60  ;;  %v323_v13 = vld [vmem:[%s571_s6] ss:$0 sm:$0xff] }
  0x2a   :  { %199 = vmatpush.msra.mxu1 %v171_v15 }
  0x2b   :  { %236 = vmatpush.msra.mxu2 %v219_v32  ;;  %274 = vmatpush.msra.mxu3 %v263_v61 }
  0x2c   :  { %200 = vmatpush.msra.mxu1 %v170_v16 }
  0x2d   :  { %237 = vmatpush.msra.mxu2 %v218_v34  ;;  %275 = vmatpush.msra.mxu3 %v262_v62 }
  0x2e   :  { %201 = vmatpush.msra.mxu1 %v169_v17  ;;  %v324_v17 = vld [vmem:[%s573_s8] ss:$0 sm:$0xff] }
  0x2f   :  { %238 = vmatpush.msra.mxu2 %v217_v37  ;;  %276 = vmatpush.msra.mxu3 %v261_v63 }
  0x30   :  { %202 = vmatpush.msra.mxu1 %v168_v18 }
  0x31   :  { %239 = vmatpush.msra.mxu2 %v216_v39  ;;  %277 = vmatpush.msra.mxu3 %v260_v0 }
  0x32   :  { %203 = vmatpush.msra.mxu1 %v167_v19 }
  0x33   :  { %240 = vmatpush.msra.mxu2 %v215_v42  ;;  %278 = vmatpush.msra.mxu3 %v259_v1 }
  0x34   :  { %204 = vmatpush.msra.mxu1 %v166_v20 }
  0x35   :  { %241 = vmatpush.msra.mxu2 %v214_v44  ;;  %279 = vmatpush.msra.mxu3 %v258_v2 }
  0x36   :  { %205 = vmatpush.msra.mxu1 %v165_v21 }
  0x37   :  { %242 = vmatpush.msra.mxu2 %v213_v47  ;;  %280 = vmatpush.msra.mxu3 %v257_v3 }
  0x39   :  { %243 = vmatpush.msra.mxu2 %v212_v49  ;;  %281 = vmatpush.msra.mxu3 %v256_v4 }
  0x3b   :  { %244 = vmatpush.msra.mxu2 %v211_v56  ;;  %282 = vmatpush.msra.mxu3 %v255_v5 }
  0x3d   :  { %245 = vmatpush.msra.mxu2 %v210_v57  ;;  %283 = vmatpush.msra.mxu3 %v254_v6 }
  0x3f   :  { %284 = vmatpush.msra.mxu3 %v253_v10 }
  0x41   :  { %285 = vmatpush.msra.mxu3 %v252_v11 }
  0x43   :  { %286 = vmatpush.msra.mxu3 %v251_v12 }
  0x9b   :  { %v145_v27 = vpop.f32.mrf.mxu0 }
  0x9c   :  { %v146_v29 = vadd.f32 %v321_v25, %v145_v27 }
  0x9e   :  { %v151_v31 = vmax.f32 %v146_v29, 0.0 }
  0xa0   :  { %v153_v33 = vrot.slane %v151_v31, 4 }
  0xa2   :  { %v154_v35 = vadd.f32 %v153_v33, %v151_v31 }
  0xa3   :  { %v148_v36 = vpop.f32.mrf.mxu0 }
  0xa4   :  { %v149_v38 = vadd.f32 %v321_v25, %v148_v36  ;;  %v155_v40 = vrot.slane %v154_v35, 2 }
  0xa6   :  { %v152_v41 = vmax.f32 %v149_v38, 0.0  ;;  %v156_v45 = vadd.f32 %v155_v40, %v154_v35 }
  0xa8   :  { %v159_v43 = vrot.slane %v152_v41, 4  ;;  %v157_v51 = vrot.slane %v156_v45, 1 }
  0xaa   :  { %v160_v46 = vadd.f32 %v159_v43, %v152_v41  ;;  %v158_v53 = vadd.f32 %v157_v51, %v156_v45 }
  0xac   :  { %v161_v48 = vrot.slane %v160_v46, 2 }
  0xae   :  { %v162_v50 = vadd.f32 %v161_v48, %v160_v46 }
  0xb0   :  { %v163_v52 = vrot.slane %v162_v50, 1 }
  0xb2   :  { %v164_v54 = vadd.f32 %v163_v52, %v162_v50 }
  0xb4   :  { %v188_v55 = vsel %vm187_vm1, %v164_v54, %v158_v53 }
  0xb5   :  { %206 = vmatmul.f32.vlgmr.msra.gmra.mxu1 %v188_v55 }
 0x132   :  { %v207_v8 = vpop.f32.mrf.mxu1 }
 0x133   :  { %v208_v9 = vadd.f32 %v322_v7, %v207_v8 }
 0x135   :  { %246 = vmatmul.f32.vlgmr.msra.gmra.mxu2 %v208_v9 }
 0x1b8   :  { %v247_v14 = vpop.f32.mrf.mxu2 }
 0x1b9   :  { %v248_v15 = vadd.f32 %v323_v13, %v247_v14 }
 0x1bb   :  { %v250_v16 = vmax.f32 %v248_v15, 0.0 }
 0x1bd   :  { %287 = vmatmul.f32.vlgmr.msra.gmra.mxu3 %v250_v16 }
 0x240   :  { %v288_v18 = vpop.f32.mrf.mxu3 }
 0x241   :  { %v289_v19 = vadd.f32 %v324_v17, %v288_v18 }
 0x243   :  { %291 = vst [vmem:[#allocation11] sm:$0x3] %v289_v19 }
 0x244   :  { %302 = dma.vmem_to_hbm [thread:$0]  %s298_s17, 32, %s300_s20, [#allocation4]  }
 0x245   :  { %475 = dma.done.wait [#allocation4], 32  }
 0x246   :  { %476 = vsyncadd [#allocation4], 4294967264 }
 0x247   :  { %307 = vsyncpa [#allocation3], 1 }
 0x248   :  { %308 = vsyncpa [#allocation6], 1 }
 0x249   :  { %309 = vsyncpa [#allocation9], 1 }
 0x24a   :  { %310 = vsyncpa [#allocation4], 1 }

// kernel: tpu_custom_call.1
= control target key start
LH: loop header
LB: loop body
LE: loop exit
PB: predicated region body
PF: predicated region fallthrough
CT: control target
= control target key end

     0   :  { %14 = vsyncpa [#allocation3], 0  ;;  %s565_s0 = inlined_call_operand.hbm [shape: f32[16,32], index: 0, kind: input, shape index: {}]   ;;  %s566_s1 = inlined_call_operand.hbm [shape: f32[32,128], index: 1, kind: input, shape index: {}]   ;;  %s567_s2 = inlined_call_operand.vmem [shape: f32[1,128], index: 2, kind: input, shape index: {}]   ;;  %s568_s3 = inlined_call_operand.hbm [shape: f32[128,128], index: 3, kind: input, shape index: {}]   ;;  %s569_s4 = inlined_call_operand.vmem [shape: f32[1,128], index: 4, kind: input, shape index: {}]   ;;  %s570_s5 = inlined_call_operand.hbm [shape: f32[128,128], index: 5, kind: input, shape index: {}]   ;;  %s571_s6 = inlined_call_operand.vmem [shape: f32[1,128], index: 6, kind: input, shape index: {}]   ;;  %s572_s7 = inlined_call_operand.hbm [shape: f32[128,128], index: 7, kind: input, shape index: {}]   ;;  %s573_s8 = inlined_call_operand.vmem [shape: f32[1,128], index: 8, kind: input, shape index: {}]   ;;  %s574_s9 = inlined_call_operand.hbm [shape: f32[2,128], index: 9, kind: output, shape index: {}]  }
   0x1   :  { %15 = vsyncpa [#allocation6], 0 }
   0x2   :  { %16 = vsyncpa [#allocation9], 0 }
   0x3   :  { %17 = vsyncpa [#allocation4], 0  ;;  %s35_s11 = sshll.u32 %s566_s1, 4  ;;  %s477_s12 = smov [#allocation5]   ;;  %s36_s11 = int_to_ptr.hbm [resolvable:$true] %s35_s11 }
   0x4   :  { %s37_s13 = sshll.u32 %s477_s12, 4  ;;  %s65_s16 = sshll.u32 %s570_s5, 4  ;;  %s38_s13 = int_to_ptr.vmem [resolvable:$true] %s37_s13  ;;  %s66_s16 = int_to_ptr.hbm [resolvable:$true] %s65_s16 }
   0x5   :  { %s478_s17 = smov 128   ;;  %s479_s18 = smov 8  }
   0x6   :  { %43 = dma.hbm_to_vmem [thread:$0]  %s36_s11, 512, %s38_s13, [#allocation6], %s478_s17, %s478_s17, %s479_s18  }
   0x7   :  { %s480_s19 = smov [#allocation8]   ;;  %s22_s23 = sshll.u32 %s565_s0, 4  ;;  %s23_s23 = int_to_ptr.hbm [resolvable:$true] %s22_s23 }
   0x8   :  { %s67_s20 = sshll.u32 %s480_s19, 4  ;;  %s50_s25 = sshll.u32 %s568_s3, 4  ;;  %s68_s20 = int_to_ptr.vmem [resolvable:$true] %s67_s20  ;;  %s51_s25 = int_to_ptr.hbm [resolvable:$true] %s50_s25 }
   0x9   :  { %73 = dma.hbm_to_vmem [thread:$0]  %s66_s16, 2048, %s68_s20, [#allocation9], %s478_s17, %s478_s17, %s479_s18  }
   0xa   :  { %s481_s26 = smov [#allocation2]   ;;  %s482_s5 = smov [#allocation7]  }
   0xb   :  { %s24_s27 = sshll.u32 %s481_s26, 4  ;;  %s52_s28 = sshll.u32 %s482_s5, 4  ;;  %s25_s27 = int_to_ptr.vmem [resolvable:$true] %s24_s27  ;;  %s53_s28 = int_to_ptr.vmem [resolvable:$true] %s52_s28 }
   0xc   :  { %30 = dma.hbm_to_vmem [thread:$0]  %s23_s23, 256, %s25_s27, [#allocation3], %s478_s17, %s478_s17, %s479_s18  }
   0xd   :  { %s80_s10 = sshll.u32 %s572_s7, 4  ;;  %s483_s0 = smov [#allocation10]   ;;  %s81_s10 = int_to_ptr.hbm [resolvable:$true] %s80_s10 }
   0xe   :  { %58 = dma.hbm_to_vmem [thread:$0]  %s51_s25, 2048, %s53_s28, [#allocation6], %s478_s17, %s478_s17, %s479_s18  }
   0xf   :  { %s82_s11 = sshll.u32 %s483_s0, 4  ;;  %s83_s11 = int_to_ptr.vmem [resolvable:$true] %s82_s11 }
  0x10   :  { %88 = dma.hbm_to_vmem [thread:$0]  %s81_s10, 2048, %s83_s11, [#allocation9], %s478_s17, %s478_s17, %s479_s18  }
  0x11   :  { %469 = dma.done.wait [#allocation3], 256  }
  0x12   :  { %470 = vsyncadd [#allocation3], 4294967040 }
  0x13   :  { %471 = dma.done.wait [#allocation6], 2560  }
  0x14   :  { %472 = vsyncadd [#allocation6], 4294964736 }
  0x15   :  { %473 = dma.done.wait [#allocation9], 4096  }
  0x16   :  { %474 = vsyncadd [#allocation9], 4294963200  ;;  %v116_v0 = vld [vmem:[#allocation5 + $0x18] sm:$0xff]  ;;  %v115_v1 = vld [vmem:[#allocation5 + $0x10] sm:$0xff]  ;;  %vm121_vm0 = vcmask 261120   ;;  %vm187_vm1 = vcmask 1041409  }
  0x17   :  { %140 = vmatpush.msra.mxu0 %v116_v0  ;;  %v114_v2 = vld [vmem:[#allocation5 + $0x8] sm:$0xff]  ;;  %v180_v3 = vld [vmem:[#allocation7 + $0x78] sm:$0xff]  ;;  %v179_v4 = vld [vmem:[#allocation7 + $0x70] sm:$0xff]  ;;  %s299_s20 = sshll.u32 %s574_s9, 4  ;;  %s300_s20 = int_to_ptr.hbm [resolvable:$true] %s299_s20 }
  0x18   :  { %v113_v5 = vld [vmem:[#allocation5] sm:$0xff]  ;;  %190 = vmatpush.msra.mxu1 %v180_v3  ;;  %v178_v6 = vld [vmem:[#allocation7 + $0x68] sm:$0xff]  ;;  %v111_v7 = vld [vmem:[#allocation2] sm:$0xff] }
  0x19   :  { %141 = vmatpush.msra.mxu0 %v115_v1  ;;  %v112_v8 = vld [vmem:[#allocation2 + $0x8] sm:$0xff]  ;;  %v177_v9 = vld [vmem:[#allocation7 + $0x60] sm:$0xff]  ;;  %v175_v11 = vld [vmem:[#allocation7 + $0x50] sm:$0xff] }
  0x1a   :  { %191 = vmatpush.msra.mxu1 %v179_v4  ;;  %v176_v10 = vld [vmem:[#allocation7 + $0x58] sm:$0xff]  ;;  %v174_v12 = vld [vmem:[#allocation7 + $0x48] sm:$0xff]  ;;  %v173_v13 = vld [vmem:[#allocation7 + $0x40] sm:$0xff] }
  0x1b   :  { %142 = vmatpush.msra.mxu0 %v114_v2  ;;  %v172_v14 = vld [vmem:[#allocation7 + $0x38] sm:$0xff]  ;;  %v171_v15 = vld [vmem:[#allocation7 + $0x30] sm:$0xff]  ;;  %v170_v16 = vld [vmem:[#allocation7 + $0x28] sm:$0xff] }
  0x1c   :  { %192 = vmatpush.msra.mxu1 %v178_v6  ;;  %v169_v17 = vld [vmem:[#allocation7 + $0x20] sm:$0xff]  ;;  %v168_v18 = vld [vmem:[#allocation7 + $0x18] sm:$0xff]  ;;  %v167_v19 = vld [vmem:[#allocation7 + $0x10] sm:$0xff] }
  0x1d   :  { %143 = vmatpush.msra.mxu0 %v113_v5  ;;  %v166_v20 = vld [vmem:[#allocation7 + $0x8] sm:$0xff]  ;;  %v165_v21 = vld [vmem:[#allocation7] sm:$0xff]  ;;  %v225_v22 = vld [vmem:[#allocation8 + $0x78] sm:$0xff] }
  0x1e   :  { %311 = vmatmul.msk.f32.vlgmr.msra.gmra.mxu0 %vm121_vm0, %v111_v7  ;;  %193 = vmatpush.msra.mxu1 %v177_v9  ;;  %v224_v23 = vld [vmem:[#allocation8 + $0x70] sm:$0xff]  ;;  %v223_v24 = vld [vmem:[#allocation8 + $0x68] sm:$0xff]  ;;  %v222_v26 = vld [vmem:[#allocation8 + $0x60] sm:$0xff] }
  0x1f   :  { %230 = vmatpush.msra.mxu2 %v225_v22  ;;  %v321_v25 = vld [vmem:[%s567_s2] ss:$0 sm:$0xff]  ;;  %v221_v28 = vld [vmem:[#allocation8 + $0x58] sm:$0xff]  ;;  %v219_v32 = vld [vmem:[#allocation8 + $0x48] sm:$0xff] }
  0x20   :  { %194 = vmatpush.msra.mxu1 %v176_v10  ;;  %v220_v30 = vld [vmem:[#allocation8 + $0x50] sm:$0xff]  ;;  %v218_v34 = vld [vmem:[#allocation8 + $0x40] sm:$0xff]  ;;  %v217_v37 = vld [vmem:[#allocation8 + $0x38] sm:$0xff] }
  0x21   :  { %231 = vmatpush.msra.mxu2 %v224_v23  ;;  %v216_v39 = vld [vmem:[#allocation8 + $0x30] sm:$0xff]  ;;  %v215_v42 = vld [vmem:[#allocation8 + $0x28] sm:$0xff]  ;;  %v214_v44 = vld [vmem:[#allocation8 + $0x20] sm:$0xff] }
  0x22   :  { %195 = vmatpush.msra.mxu1 %v175_v11  ;;  %v213_v47 = vld [vmem:[#allocation8 + $0x18] sm:$0xff]  ;;  %v212_v49 = vld [vmem:[#allocation8 + $0x10] sm:$0xff]  ;;  %v211_v56 = vld [vmem:[#allocation8 + $0x8] sm:$0xff] }
  0x23   :  { %232 = vmatpush.msra.mxu2 %v223_v24  ;;  %v210_v57 = vld [vmem:[#allocation8] sm:$0xff]  ;;  %v266_v58 = vld [vmem:[#allocation10 + $0x78] sm:$0xff]  ;;  %v265_v59 = vld [vmem:[#allocation10 + $0x70] sm:$0xff] }
  0x24   :  { %196 = vmatpush.msra.mxu1 %v174_v12  ;;  %271 = vmatpush.msra.mxu3 %v266_v58  ;;  %v264_v60 = vld [vmem:[#allocation10 + $0x68] sm:$0xff]  ;;  %v263_v61 = vld [vmem:[#allocation10 + $0x60] sm:$0xff]  ;;  %v262_v62 = vld [vmem:[#allocation10 + $0x58] sm:$0xff] }
  0x25   :  { %233 = vmatpush.msra.mxu2 %v222_v26  ;;  %v261_v63 = vld [vmem:[#allocation10 + $0x50] sm:$0xff]  ;;  %v260_v0 = vld [vmem:[#allocation10 + $0x48] sm:$0xff]  ;;  %v259_v1 = vld [vmem:[#allocation10 + $0x40] sm:$0xff] }
  0x26   :  { %312 = vmatmul.msk.f32.gmra.mxu0 %vm121_vm0, %v112_v8  ;;  %197 = vmatpush.msra.mxu1 %v173_v13  ;;  %v258_v2 = vld [vmem:[#allocation10 + $0x38] sm:$0xff]  ;;  %v257_v3 = vld [vmem:[#allocation10 + $0x30] sm:$0xff]  ;;  %v256_v4 = vld [vmem:[#allocation10 + $0x28] sm:$0xff] }
  0x27   :  { %234 = vmatpush.msra.mxu2 %v221_v28  ;;  %272 = vmatpush.msra.mxu3 %v265_v59  ;;  %v255_v5 = vld [vmem:[#allocation10 + $0x20] sm:$0xff]  ;;  %v254_v6 = vld [vmem:[#allocation10 + $0x18] sm:$0xff]  ;;  %v322_v7 = vld [vmem:[%s569_s4] ss:$0 sm:$0xff]  ;;  %s484_s4 = smov [#allocation11]  }
  0x28   :  { %198 = vmatpush.msra.mxu1 %v172_v14  ;;  %v253_v10 = vld [vmem:[#allocation10 + $0x10] sm:$0xff]  ;;  %v252_v11 = vld [vmem:[#allocation10 + $0x8] sm:$0xff]  ;;  %v251_v12 = vld [vmem:[#allocation10] sm:$0xff]  ;;  %s297_s17 = sshll.u32 %s484_s4, 4  ;;  %s298_s17 = int_to_ptr.vmem [resolvable:$true] %s297_s17 }
  0x29   :  { %235 = vmatpush.msra.mxu2 %v220_v30  ;;  %273 = vmatpush.msra.mxu3 %v264_v60  ;;  %v323_v13 = vld [vmem:[%s571_s6] ss:$0 sm:$0xff] }
  0x2a   :  { %199 = vmatpush.msra.mxu1 %v171_v15 }
  0x2b   :  { %236 = vmatpush.msra.mxu2 %v219_v32  ;;  %274 = vmatpush.msra.mxu3 %v263_v61 }
  0x2c   :  { %200 = vmatpush.msra.mxu1 %v170_v16 }
  0x2d   :  { %237 = vmatpush.msra.mxu2 %v218_v34  ;;  %275 = vmatpush.msra.mxu3 %v262_v62 }
  0x2e   :  { %201 = vmatpush.msra.mxu1 %v169_v17  ;;  %v324_v17 = vld [vmem:[%s573_s8] ss:$0 sm:$0xff] }
  0x2f   :  { %238 = vmatpush.msra.mxu2 %v217_v37  ;;  %276 = vmatpush.msra.mxu3 %v261_v63 }
  0x30   :  { %202 = vmatpush.msra.mxu1 %v168_v18 }
  0x31   :  { %239 = vmatpush.msra.mxu2 %v216_v39  ;;  %277 = vmatpush.msra.mxu3 %v260_v0 }
  0x32   :  { %203 = vmatpush.msra.mxu1 %v167_v19 }
  0x33   :  { %240 = vmatpush.msra.mxu2 %v215_v42  ;;  %278 = vmatpush.msra.mxu3 %v259_v1 }
  0x34   :  { %204 = vmatpush.msra.mxu1 %v166_v20 }
  0x35   :  { %241 = vmatpush.msra.mxu2 %v214_v44  ;;  %279 = vmatpush.msra.mxu3 %v258_v2 }
  0x36   :  { %205 = vmatpush.msra.mxu1 %v165_v21 }
  0x37   :  { %242 = vmatpush.msra.mxu2 %v213_v47  ;;  %280 = vmatpush.msra.mxu3 %v257_v3 }
  0x39   :  { %243 = vmatpush.msra.mxu2 %v212_v49  ;;  %281 = vmatpush.msra.mxu3 %v256_v4 }
  0x3b   :  { %244 = vmatpush.msra.mxu2 %v211_v56  ;;  %282 = vmatpush.msra.mxu3 %v255_v5 }
  0x3d   :  { %245 = vmatpush.msra.mxu2 %v210_v57  ;;  %283 = vmatpush.msra.mxu3 %v254_v6 }
  0x3f   :  { %284 = vmatpush.msra.mxu3 %v253_v10 }
  0x41   :  { %285 = vmatpush.msra.mxu3 %v252_v11 }
  0x43   :  { %286 = vmatpush.msra.mxu3 %v251_v12 }
  0x9b   :  { %v145_v27 = vpop.f32.mrf.mxu0 }
  0x9c   :  { %v146_v29 = vadd.f32 %v321_v25, %v145_v27 }
  0x9e   :  { %v151_v31 = vmax.f32 %v146_v29, 0.0 }
  0xa0   :  { %v153_v33 = vrot.slane %v151_v31, 4 }
  0xa2   :  { %v154_v35 = vadd.f32 %v153_v33, %v151_v31 }
  0xa3   :  { %v148_v36 = vpop.f32.mrf.mxu0 }
  0xa4   :  { %v149_v38 = vadd.f32 %v321_v25, %v148_v36  ;;  %v155_v40 = vrot.slane %v154_v35, 2 }
  0xa6   :  { %v152_v41 = vmax.f32 %v149_v38, 0.0  ;;  %v156_v45 = vadd.f32 %v155_v40, %v154_v35 }
  0xa8   :  { %v159_v43 = vrot.slane %v152_v41, 4  ;;  %v157_v51 = vrot.slane %v156_v45, 1 }
  0xaa   :  { %v160_v46 = vadd.f32 %v159_v43, %v152_v41  ;;  %v158_v53 = vadd.f32 %v157_v51, %v156_v45 }
  0xac   :  { %v161_v48 = vrot.slane %v160_v46, 2 }
  0xae   :  { %v162_v50 = vadd.f32 %v161_v48, %v160_v46 }
  0xb0   :  { %v163_v52 = vrot.slane %v162_v50, 1 }
  0xb2   :  { %v164_v54 = vadd.f32 %v163_v52, %v162_v50 }
  0xb4   :  { %v188_v55 = vsel %vm187_vm1, %v164_v54, %v158_v53 }
  0xb5   :  { %206 = vmatmul.f32.vlgmr.msra.gmra.mxu1 %v188_v55 }
 0x132   :  { %v207_v8 = vpop.f32.mrf.mxu1 }
 0x133   :  { %v208_v9 = vadd.f32 %v322_v7, %v207_v8 }
 0x135   :  { %246 = vmatmul.f32.vlgmr.msra.gmra.mxu2 %v208_v9 }
 0x1b8   :  { %v247_v14 = vpop.f32.mrf.mxu2 }
 0x1b9   :  { %v248_v15 = vadd.f32 %v323_v13, %v247_v14 }
 0x1bb   :  { %v250_v16 = vmax.f32 %v248_v15, 0.0 }
 0x1bd   :  { %287 = vmatmul.f32.vlgmr.msra.gmra.mxu3 %v250_v16 }
 0x240   :  { %v288_v18 = vpop.f32.mrf.mxu3 }
 0x241   :  { %v289_v19 = vadd.f32 %v324_v17, %v288_v18 }
 0x243   :  { %291 = vst [vmem:[#allocation11] sm:$0x3] %v289_v19 }
 0x244   :  { %302 = dma.vmem_to_hbm [thread:$0]  %s298_s17, 32, %s300_s20, [#allocation4]  }
 0x245   :  { %475 = dma.done.wait [#allocation4], 32  }
 0x246   :  { %476 = vsyncadd [#allocation4], 4294967264 }
 0x247   :  { %307 = vsyncpa [#allocation3], 1 }
 0x248   :  { %308 = vsyncpa [#allocation6], 1 }
 0x249   :  { %309 = vsyncpa [#allocation9], 1 }
 0x24a   :  { %310 = vsyncpa [#allocation4], 1 }

</bundles_post_ra>
